<compile_context>
chip_gen: v6e
topology: v6e:2x2x1
jax: 0.10.0
libtpu: 0.0.40
codegen_flags: <defaults>
</compile_context>

<pallas_src>
import math

import jax
import jax.numpy as jnp
import numpy as np
from jax import lax
from jax.experimental import pallas as pl
from jax.experimental.pallas import tpu as pltpu

GN_EPS = 1e-5  # PyTorch GroupNorm default


# ----------------------------------------------------------------------------
# Bilinear-resize matrices (host-side, static shapes only)
# ----------------------------------------------------------------------------
def _bilinear_matrix(dst, src):
    """Row interpolation matrix of F.interpolate(mode='bilinear', align_corners=True)."""
    m = np.zeros((dst, src), np.float32)
    for t in range(dst):
        p = t * (src - 1) / (dst - 1) if dst > 1 else 0.0
        i0 = min(int(math.floor(p)), src - 1)
        i1 = min(i0 + 1, src - 1)
        w = p - i0
        m[t, i0] += 1.0 - w
        m[t, i1] += w
    return m


def _kron_resize_matrix_T(Ht, Wt, Hs, Ws):
    """(Hs*Ws, Ht*Wt) matrix KT such that resized_flat = src_flat @ KT."""
    k = np.kron(_bilinear_matrix(Ht, Hs), _bilinear_matrix(Wt, Ws))  # (HtWt, HsWs)
    return jnp.asarray(k.T)


# ----------------------------------------------------------------------------
# Fused per-output-level kernel
# ----------------------------------------------------------------------------
def _make_fused_level_kernel(num_sources):
    """ref order: scalars(SMEM), x, [src, p, wblk, kt] * S, [expand], out.

    scalars = [scale_weight, output_weight, b_gate_0, ..., b_gate_{S-1}]
    p       = packed per-channel params [w_dw, b_dw, gamma, beta], (N*C, 4)
    wblk    = block-diagonal gate weights, (N, N*C)
    kt      = Kronecker bilinear-resize matrix, (HWs, HWt)
    expand  = per-sample broadcast matrix, (N*C, N)
    """
    def kernel(*refs):
        scal_ref, x_ref = refs[0], refs[1]
        out_ref = refs[-1]
        sw = scal_ref[0]
        ow = scal_ref[1]
        x = x_ref[...].astype(jnp.float32)                          # (NC, HWt)

        if num_sources == 0:
            # sum([]) == 0 in the reference -> output = x * output_weight
            out_ref[...] = (x * ow).astype(out_ref.dtype)
            return

        expand = refs[2 + 4 * num_sources][...]                     # (NC, N)
        acc = jnp.zeros_like(x)
        for s in range(num_sources):
            src_ref, p_ref, wblk_ref, kt_ref = refs[2 + 4 * s: 6 + 4 * s]
            src = src_ref[...].astype(jnp.float32)                  # (NC, HWs)
            p = p_ref[...]                                          # (NC, 4)

            # depthwise 1x1 conv == per-channel scale + bias
            y = src * p[:, 0:1] + p[:, 1:2]

            # GroupNorm(32, C), C == 32 -> per-(n, c) stats over HW (centered)
            mean = jnp.mean(y, axis=1, keepdims=True)
            yc = y - mean
            var = jnp.mean(yc * yc, axis=1, keepdims=True)
            yn = yc * lax.rsqrt(var + GN_EPS) * p[:, 2:3] + p[:, 3:4]

            # SpatialGate: 1x1 conv (C -> 1) on the ORIGINAL input via a
            # block-diagonal MXU matmul, ReTanH, broadcast back over channels.
            g = jnp.dot(wblk_ref[...], src,
                        preferred_element_type=jnp.float32) + scal_ref[2 + s]
            gate = jnp.maximum(jnp.tanh(g), 0.0)                    # (N, HWs)
            gate_full = jnp.dot(expand, gate,
                                preferred_element_type=jnp.float32)  # (NC, HWs)

            # bilinear resize (align_corners=True) as one Kronecker matmul
            acc += jnp.dot(yn * gate_full, kt_ref[...],
                           preferred_element_type=jnp.float32)      # (NC, HWt)

        out_ref[...] = (acc * sw + x * ow).astype(out_ref.dtype)

    return kernel


def fused_level(x, sources, scale_weight, output_weight):
    """Compute one DynamicScale output level.

    x:       (N, C, Ht, Wt) input of this level
    sources: list of (source input (N, C, Hs, Ws), module params) pairs
    """
    N, C, Ht, Wt = x.shape
    assert C == 32, "GroupNorm(32, C) with group size 1 requires C == 32"
    HWt = Ht * Wt
    NC = N * C
    S = len(sources)

    scalars = jnp.concatenate(
        [jnp.asarray(scale_weight, jnp.float32).reshape(1),
         jnp.asarray(output_weight, jnp.float32).reshape(1)]
        + [jnp.asarray(m["b_gate"], jnp.float32).reshape(1) for _, m in sources])

    args = [scalars, x.reshape(NC, HWt)]
    in_specs = [
        pl.BlockSpec(memory_space=pltpu.MemorySpace.SMEM),
        pl.BlockSpec((NC, HWt), lambda i: (0, 0)),
    ]

    eye_n = np.eye(N, dtype=np.float32)
    for src, m in sources:
        Hs, Ws = src.shape[-2:]
        HWs = Hs * Ws
        # packed per-channel params, tiled over the batch: (NC, 4), one DMA
        p = jnp.tile(
            jnp.stack([m["w_dw"], m["b_dw"], m["gamma"], m["beta"]],
                      axis=1).astype(jnp.float32), (N, 1))
        # block-diagonal gate weights: (N, NC)
        wblk = jnp.kron(jnp.asarray(eye_n),
                        m["w_gate"].astype(jnp.float32).reshape(1, C))
        kt = _kron_resize_matrix_T(Ht, Wt, Hs, Ws)                  # (HWs, HWt)
        args += [src.reshape(NC, HWs), p, wblk, kt]
        in_specs += [
            pl.BlockSpec((NC, HWs), lambda i: (0, 0)),
            pl.BlockSpec((NC, 4), lambda i: (0, 0)),
            pl.BlockSpec((N, NC), lambda i: (0, 0)),
            pl.BlockSpec((HWs, HWt), lambda i: (0, 0)),
        ]
    if S > 0:
        expand = jnp.asarray(np.kron(eye_n, np.ones((C, 1), np.float32)))
        args.append(expand)                                          # (NC, N)
        in_specs.append(pl.BlockSpec((NC, N), lambda i: (0, 0)))

    out = pl.pallas_call(
        _make_fused_level_kernel(S),
        out_shape=jax.ShapeDtypeStruct((NC, HWt), x.dtype),
        grid_spec=pltpu.PrefetchScalarGridSpec(
            num_scalar_prefetch=0,
            grid=(1,),
            in_specs=in_specs,
            out_specs=pl.BlockSpec((NC, HWt), lambda i: (0, 0)),
        ),
        compiler_params=pltpu.CompilerParams(
            dimension_semantics=("arbitrary",)),
    )(*args)
    return out.reshape(N, C, Ht, Wt)


# ----------------------------------------------------------------------------
# DynamicScale forward
# ----------------------------------------------------------------------------
def dynamic_scale_forward(inputs, params):
    modules = params["modules"]
    num_adj = len(modules)                      # num_adjacent_scales
    L = len(inputs)

    outputs = []
    for l, x in enumerate(inputs):
        # dynamic_scales[k][s] feeds exactly one output level, so the whole
        # dyn_conv -> resize -> combine chain is fused per output level.
        sources = []
        for s in range(num_adj):
            l_src = l + s - num_adj // 2
            l_src = l_src if l_src < l else l_src + 1
            if 0 <= l_src < L:
                sources.append((inputs[l_src], modules[s]))
        outputs.append(
            fused_level(x, sources, params["scale_weight"],
                        params["output_weight"]))
    # TODO(synk): SpatialGate.update_running_cost (training-time cost
    # bookkeeping) is a stateful side effect with no output impact; skipped.
    return tuple(outputs)


# ----------------------------------------------------------------------------
# Deterministic parameter init (shapes from the module __init__).
# ----------------------------------------------------------------------------
def make_params(C, num_adjacent_scales=2, seed=0):
    key = jax.random.PRNGKey(seed)
    modules = []
    bias_value = 0.5 * math.log((1 + 0.99) / (1 - 0.99))   # ReTanH init_gate=0.99
    for _ in range(num_adjacent_scales):
        key, k1, k2 = jax.random.split(key, 3)
        modules.append(dict(
            w_dw=0.01 * jax.random.normal(k1, (C,), jnp.float32),   # Conv2d(C,C,1,groups=C)
            b_dw=jnp.zeros((C,), jnp.float32),
            gamma=jnp.ones((C,), jnp.float32),                      # GroupNorm weight
            beta=jnp.zeros((C,), jnp.float32),                      # GroupNorm bias
            w_gate=0.01 * jax.random.normal(k2, (C,), jnp.float32), # Conv2d(C,1,1)
            b_gate=jnp.float32(bias_value),
        ))
    return dict(
        modules=modules,
        # __init__ defaults are scale_weight=0, output_weight=1; nonzero
        # scale_weight so the cross-scale fusion path is exercised.
        scale_weight=jnp.full((1,), 0.5, jnp.float32),
        output_weight=jnp.ones((1,), jnp.float32),
    )


if __name__ == "__main__":
    N, C = 2, 32
    sizes = [16, 8, 4]                  # 3 pyramid levels
    key = jax.random.PRNGKey(0)
    inputs = []
    for s in sizes:
        key, k = jax.random.split(key)
        inputs.append(jax.random.normal(k, (N, C, s, s), jnp.float32))

    params = make_params(C, num_adjacent_scales=2, seed=0)
    outputs = dynamic_scale_forward(inputs, params)
    for o, x in zip(outputs, inputs):
        jax.block_until_ready(o)
        assert o.shape == x.shape and o.dtype == x.dtype
        assert bool(jnp.all(jnp.isfinite(o)))
    print("KERNEL_OK")
</pallas_src>

<mosaic_0001>
module attributes {stable_mosaic.version = 11 : i64} {
  func.func @kernel(%arg0: i32, %arg1: memref<3xf32, #tpu.memory_space<smem>>, %arg2: memref<64x256xf32, #tpu.memory_space<vmem>>, %arg3: memref<64x64xf32, #tpu.memory_space<vmem>>, %arg4: memref<64x4xf32, #tpu.memory_space<vmem>>, %arg5: memref<2x64xf32, #tpu.memory_space<vmem>>, %arg6: memref<64x256xf32, #tpu.memory_space<vmem>>, %arg7: memref<64x2xf32, #tpu.memory_space<vmem>>, %arg8: memref<64x256xf32, #tpu.memory_space<vmem>>) attributes {dimension_semantics = [#tpu.dimension_semantics<arbitrary>], iteration_bounds = array<i64: 1>, scalar_prefetch = 0 : i64, scratch_operands = 0 : i64, tpu.core_type = #tpu.core_type<tc>, window_params = [{transform_indices = @transform_0, window_bounds = array<i64: 3>}, {pipeline_mode = #tpu.pipeline_mode<synchronous>, transform_indices = @transform_1, window_bounds = array<i64: 64, 256>}, {pipeline_mode = #tpu.pipeline_mode<synchronous>, transform_indices = @transform_2, window_bounds = array<i64: 64, 64>}, {pipeline_mode = #tpu.pipeline_mode<synchronous>, transform_indices = @transform_3, window_bounds = array<i64: 64, 4>}, {pipeline_mode = #tpu.pipeline_mode<synchronous>, transform_indices = @transform_4, window_bounds = array<i64: 2, 64>}, {pipeline_mode = #tpu.pipeline_mode<synchronous>, transform_indices = @transform_5, window_bounds = array<i64: 64, 256>}, {pipeline_mode = #tpu.pipeline_mode<synchronous>, transform_indices = @transform_6, window_bounds = array<i64: 64, 2>}, {pipeline_mode = #tpu.pipeline_mode<synchronous>, transform_indices = @transform_7, window_bounds = array<i64: 64, 256>}]} {
    %c0 = arith.constant 0 : index
    %0 = memref.load %arg1[%c0] : memref<3xf32, #tpu.memory_space<smem>>
    %c1 = arith.constant 1 : index
    %1 = memref.load %arg1[%c1] : memref<3xf32, #tpu.memory_space<smem>>
    %c0_0 = arith.constant 0 : index
    %c0_1 = arith.constant 0 : index
    %2 = vector.load %arg2[%c0_0, %c0_1] : memref<64x256xf32, #tpu.memory_space<vmem>>, vector<64x256xf32>
    %c0_2 = arith.constant 0 : index
    %c0_3 = arith.constant 0 : index
    %3 = vector.load %arg7[%c0_2, %c0_3] : memref<64x2xf32, #tpu.memory_space<vmem>>, vector<64x2xf32>
    %cst = arith.constant 0.000000e+00 : f32
    %4 = vector.broadcast %cst : f32 to vector<64x256xf32>
    %c0_4 = arith.constant 0 : index
    %c0_5 = arith.constant 0 : index
    %5 = vector.load %arg3[%c0_4, %c0_5] : memref<64x64xf32, #tpu.memory_space<vmem>>, vector<64x64xf32>
    %c0_6 = arith.constant 0 : index
    %c0_7 = arith.constant 0 : index
    %6 = vector.load %arg4[%c0_6, %c0_7] : memref<64x4xf32, #tpu.memory_space<vmem>>, vector<64x4xf32>
    %7 = vector.extract_strided_slice %6 {offsets = [0, 0], sizes = [64, 1], strides = [1, 1]} : vector<64x4xf32> to vector<64x1xf32>
    %8 = vector.broadcast %7 : vector<64x1xf32> to vector<64x64xf32>
    %9 = arith.mulf %5, %8 : vector<64x64xf32>
    %10 = vector.extract_strided_slice %6 {offsets = [0, 1], sizes = [64, 1], strides = [1, 1]} : vector<64x4xf32> to vector<64x1xf32>
    %11 = vector.broadcast %10 : vector<64x1xf32> to vector<64x64xf32>
    %12 = arith.addf %9, %11 : vector<64x64xf32>
    %cst_8 = arith.constant dense<0.000000e+00> : vector<64xf32>
    %13 = vector.multi_reduction <add>, %12, %cst_8 [1] : vector<64x64xf32> to vector<64xf32>
    %14 = vector.shape_cast %13 : vector<64xf32> to vector<64x1xf32>
    %cst_9 = arith.constant 6.400000e+01 : f32
    %15 = vector.broadcast %cst_9 : f32 to vector<64x1xf32>
    %16 = arith.divf %14, %15 : vector<64x1xf32>
    %17 = vector.broadcast %16 : vector<64x1xf32> to vector<64x64xf32>
    %18 = arith.subf %12, %17 : vector<64x64xf32>
    %19 = arith.mulf %18, %18 : vector<64x64xf32>
    %cst_10 = arith.constant dense<0.000000e+00> : vector<64xf32>
    %20 = vector.multi_reduction <add>, %19, %cst_10 [1] : vector<64x64xf32> to vector<64xf32>
    %21 = vector.shape_cast %20 : vector<64xf32> to vector<64x1xf32>
    %cst_11 = arith.constant 6.400000e+01 : f32
    %22 = vector.broadcast %cst_11 : f32 to vector<64x1xf32>
    %23 = arith.divf %21, %22 : vector<64x1xf32>
    %cst_12 = arith.constant 9.99999974E-6 : f32
    %24 = vector.broadcast %cst_12 : f32 to vector<64x1xf32>
    %25 = arith.addf %23, %24 : vector<64x1xf32>
    %26 = math.rsqrt %25 : vector<64x1xf32>
    %27 = vector.broadcast %26 : vector<64x1xf32> to vector<64x64xf32>
    %28 = arith.mulf %18, %27 : vector<64x64xf32>
    %29 = vector.extract_strided_slice %6 {offsets = [0, 2], sizes = [64, 1], strides = [1, 1]} : vector<64x4xf32> to vector<64x1xf32>
    %30 = vector.broadcast %29 : vector<64x1xf32> to vector<64x64xf32>
    %31 = arith.mulf %28, %30 : vector<64x64xf32>
    %32 = vector.extract_strided_slice %6 {offsets = [0, 3], sizes = [64, 1], strides = [1, 1]} : vector<64x4xf32> to vector<64x1xf32>
    %33 = vector.broadcast %32 : vector<64x1xf32> to vector<64x64xf32>
    %34 = arith.addf %31, %33 : vector<64x64xf32>
    %c0_13 = arith.constant 0 : index
    %c0_14 = arith.constant 0 : index
    %35 = vector.load %arg5[%c0_13, %c0_14] : memref<2x64xf32, #tpu.memory_space<vmem>>, vector<2x64xf32>
    %cst_15 = arith.constant dense<0.000000e+00> : vector<2x64xf32>
    %36 = tpu.matmul %35, %5, %cst_15 {dimension_numbers = #tpu.dot_dimension_numbers<[1], [0], [0], [1], [0, 0, 1, 1], [], []>} : vector<2x64xf32>, vector<64x64xf32>, vector<2x64xf32> -> vector<2x64xf32>
    %c2 = arith.constant 2 : index
    %37 = memref.load %arg1[%c2] : memref<3xf32, #tpu.memory_space<smem>>
    %38 = vector.broadcast %37 : f32 to vector<2x64xf32>
    %39 = arith.addf %36, %38 : vector<2x64xf32>
    %40 = math.tanh %39 : vector<2x64xf32>
    %cst_16 = arith.constant 0.000000e+00 : f32
    %41 = vector.broadcast %cst_16 : f32 to vector<2x64xf32>
    %42 = arith.maximumf %40, %41 : vector<2x64xf32>
    %cst_17 = arith.constant dense<0.000000e+00> : vector<64x64xf32>
    %43 = tpu.matmul %3, %42, %cst_17 {dimension_numbers = #tpu.dot_dimension_numbers<[1], [0], [0], [1], [0, 0, 1, 1], [], []>} : vector<64x2xf32>, vector<2x64xf32>, vector<64x64xf32> -> vector<64x64xf32>
    %44 = arith.mulf %34, %43 : vector<64x64xf32>
    %c0_18 = arith.constant 0 : index
    %c0_19 = arith.constant 0 : index
    %45 = vector.load %arg6[%c0_18, %c0_19] : memref<64x256xf32, #tpu.memory_space<vmem>>, vector<64x256xf32>
    %cst_20 = arith.constant dense<0.000000e+00> : vector<64x256xf32>
    %46 = tpu.matmul %44, %45, %cst_20 {dimension_numbers = #tpu.dot_dimension_numbers<[1], [0], [0], [1], [0, 0, 1, 1], [], []>} : vector<64x64xf32>, vector<64x256xf32>, vector<64x256xf32> -> vector<64x256xf32>
    %47 = arith.addf %4, %46 : vector<64x256xf32>
    %48 = vector.broadcast %0 : f32 to vector<64x256xf32>
    %49 = arith.mulf %47, %48 : vector<64x256xf32>
    %50 = vector.broadcast %1 : f32 to vector<64x256xf32>
    %51 = arith.mulf %2, %50 : vector<64x256xf32>
    %52 = arith.addf %49, %51 : vector<64x256xf32>
    %c0_21 = arith.constant 0 : index
    %c0_22 = arith.constant 0 : index
    %53 = vector.load %arg8[%c0_21, %c0_22] : memref<64x256xf32, #tpu.memory_space<vmem>>, vector<64x256xf32>
    tpu.vector_store %arg8[%c0_21, %c0_22], %52 {strides = array<i32>} : memref<64x256xf32, #tpu.memory_space<vmem>>, vector<64x256xf32>,
    return
  }
  func.func @transform_0(%arg0: i32) -> i32 {
    %c0_i32 = arith.constant 0 : i32
    %c0_i32_0 = arith.constant 0 : i32
    return %c0_i32 : i32
  }
  func.func @transform_1(%arg0: i32) -> (i32, i32) {
    %c0_i32 = arith.constant 0 : i32
    %c0_i32_0 = arith.constant 0 : i32
    %c0_i32_1 = arith.constant 0 : i32
    return %c0_i32, %c0_i32_0 : i32, i32
  }
  func.func @transform_2(%arg0: i32) -> (i32, i32) {
    %c0_i32 = arith.constant 0 : i32
    %c0_i32_0 = arith.constant 0 : i32
    %c0_i32_1 = arith.constant 0 : i32
    return %c0_i32, %c0_i32_0 : i32, i32
  }
  func.func @transform_3(%arg0: i32) -> (i32, i32) {
    %c0_i32 = arith.constant 0 : i32
    %c0_i32_0 = arith.constant 0 : i32
    %c0_i32_1 = arith.constant 0 : i32
    return %c0_i32, %c0_i32_0 : i32, i32
  }
  func.func @transform_4(%arg0: i32) -> (i32, i32) {
    %c0_i32 = arith.constant 0 : i32
    %c0_i32_0 = arith.constant 0 : i32
    %c0_i32_1 = arith.constant 0 : i32
    return %c0_i32, %c0_i32_0 : i32, i32
  }
  func.func @transform_5(%arg0: i32) -> (i32, i32) {
    %c0_i32 = arith.constant 0 : i32
    %c0_i32_0 = arith.constant 0 : i32
    %c0_i32_1 = arith.constant 0 : i32
    return %c0_i32, %c0_i32_0 : i32, i32
  }
  func.func @transform_6(%arg0: i32) -> (i32, i32) {
    %c0_i32 = arith.constant 0 : i32
    %c0_i32_0 = arith.constant 0 : i32
    %c0_i32_1 = arith.constant 0 : i32
    return %c0_i32, %c0_i32_0 : i32, i32
  }
  func.func @transform_7(%arg0: i32) -> (i32, i32) {
    %c0_i32 = arith.constant 0 : i32
    %c0_i32_0 = arith.constant 0 : i32
    %c0_i32_1 = arith.constant 0 : i32
    return %c0_i32, %c0_i32_0 : i32, i32
  }
}

</mosaic_0001>

<bundles_post_ra>
// kernel: tpu_custom_call.1
= control target key start
LH: loop header
LB: loop body
LE: loop exit
PB: predicated region body
PF: predicated region fallthrough
CT: control target
= control target key end

     0   :  { %12 = vsyncpa [#allocation5], 0  ;;  %s1507_s0 = inlined_call_operand.vmem [shape: f32[3], index: 0, kind: input, shape index: {}]   ;;  %s1508_s1 = inlined_call_operand.vmem [shape: f32[64,256], index: 1, kind: input, shape index: {}]   ;;  %s1509_s2 = inlined_call_operand.hbm [shape: f32[64,64], index: 2, kind: input, shape index: {}]   ;;  %s1510_s3 = inlined_call_operand.vmem [shape: f32[64,4], index: 3, kind: input, shape index: {}]   ;;  %s1511_s4 = inlined_call_operand.vmem [shape: f32[2,64], index: 4, kind: input, shape index: {}]   ;;  %s1512_s5 = inlined_call_operand.hbm [shape: f32[64,256], index: 5, kind: input, shape index: {}]   ;;  %s1513_s6 = inlined_call_operand.vmem [shape: f32[64,2], index: 6, kind: input, shape index: {}]   ;;  %s1514_s7 = inlined_call_operand.hbm [shape: f32[64,256], index: 7, kind: output, shape index: {}]  }
   0x1   :  { %13 = vsyncpa [#allocation3], 0 }
   0x2   :  { %14 = vsyncpa [#allocation8], 0 }
   0x3   :  { %15 = vsyncpa [#allocation4], 0  ;;  %s22_s26 = sshll.u32 %s1507_s0, 4  ;;  %s23_s26 = int_to_ptr.vmem [resolvable:$true] %s22_s26 }
   0x4   :  { %s982_s27 = scalar_lea.vmem %s23_s26, 16  ;;  %p987_p1 = scmp.lt.s32.totalorder %s23_s26, %s23_s26 }
   0x5   :  { %p983_p0 = scmp.ne.s32.totalorder %s23_s26, %s982_s27  ;;  %p988_p2 = scmp.lt.s32.totalorder %s982_s27, %s982_s27 }
   0x7   :  { %p989_p3 = por %p988_p2, %p987_p1 }
   0x9   :  { %p990_p4 = pnand %p989_p3, %p983_p0 }
   0xb   :  { %993 = shalt.err (!%p990_p4)
}
   0xc   :  { %s1062_s28 = smov [#allocation2]   ;;  %s1063_s29 = smov [#allocation6]  }
   0xd   :  { %25 = dma.vmem_to_smem %s23_s26, 16, %s1062_s28, [#allocation5]  }
   0xe   :  { %s33_s30 = sshll.u32 %s1063_s29, 4  ;;  %s34_s30 = int_to_ptr.vmem [resolvable:$true] %s33_s30 }
   0xf   :  { %s1002_s8 = scalar_lea.vmem %s34_s30, 1024  ;;  %p1007_p6 = scmp.lt.s32.totalorder %s34_s30, %s34_s30 }
  0x10   :  { %p1003_p5 = scmp.ne.s32.totalorder %s34_s30, %s1002_s8  ;;  %p1008_p7 = scmp.lt.s32.totalorder %s1002_s8, %s1002_s8 }
  0x12   :  { %p1009_p8 = por %p1008_p7, %p1007_p6 }
  0x14   :  { %p1010_p9 = pnand %p1009_p8, %p1003_p5 }
  0x16   :  { %1013 = shalt.err (!%p1010_p9)
}
  0x17   :  { %s1064_s0 = smov 128   ;;  %s1065_s9 = smov 8  }
  0x18   :  { %39 = dma.hbm_to_vmem [thread:$0]  %s1509_s2, 1024, %s34_s30, [#allocation3], %s1064_s0, %s1064_s0, %s1065_s9  }
  0x19   :  { %s1066_s12 = smov [#allocation7]  }
  0x1a   :  { %s49_s13 = sshll.u32 %s1066_s12, 4  ;;  %s50_s13 = int_to_ptr.vmem [resolvable:$true] %s49_s13 }
  0x1b   :  { %s1022_s14 = scalar_lea.vmem %s50_s13, 2048  ;;  %p1027_p11 = scmp.lt.s32.totalorder %s50_s13, %s50_s13 }
  0x1c   :  { %p1023_p10 = scmp.ne.s32.totalorder %s50_s13, %s1022_s14  ;;  %p1028_p12 = scmp.lt.s32.totalorder %s1022_s14, %s1022_s14 }
  0x1e   :  { %p1029_p13 = por %p1028_p12, %p1027_p11 }
  0x20   :  { %p1030_p0 = pnand %p1029_p13, %p1023_p10 }
  0x22   :  { %1033 = shalt.err (!%p1030_p0)
}
  0x23   :  { %s1067_s15 = smov 256   ;;  %s1068_s16 = smov 16  }
  0x24   :  { %55 = dma.hbm_to_vmem [thread:$0]  %s1512_s5, 2048, %s50_s13, [#allocation8], %s1067_s15, %s1067_s15, %s1068_s16  }
  0x25   :  { %1054 = dma.done.wait [#allocation5], 16  }
  0x26   :  { %1055 = vsyncadd [#allocation5], 4294967280 }
  0x27   :  { %1056 = dma.done.wait [#allocation3], 1024  }
  0x28   :  { %1057 = vsyncadd [#allocation3], 4294966272 }
  0x29   :  { %1058 = dma.done.wait [#allocation8], 2048  }
  0x2a   :  { %1059 = vsyncadd [#allocation8], 4294965248 }
  0x2b   :  { %67 = sfence }
  0x2c   :  { %v1131_v0 = vld [vmem:[%s1510_s3 + $0x18] sm:$0xff]  ;;  %v1136_v1 = vld [vmem:[%s1510_s3 + $0x10] sm:$0xff]  ;;  %v1069_v2 = vmov 0   ;;  %v1070_v5 = vmov 0.0   ;;  %vm1071_vm0 = vmmov 0   ;;  %v1072_v7 = vmov 1  }
  0x2d   :  { %944 = vset.pattern.permute.xlu1 %v1069_v2  ;;  %943 = vset.pattern.permute.xlu0 %v1069_v2  ;;  %v1140_v3 = vld [vmem:[#allocation6 + $0x38] sm:$0xff]  ;;  %v1145_v4 = vld [vmem:[%s1510_s3 + $0x30] sm:$0xff]  ;;  %v1154_v8 = vld [vmem:[#allocation6 + $0x28] sm:$0xff]  ;;  %vm198_vm1 = vcmask 523264   ;;  %v1073_v20 = vmov 2   ;;  %v1074_v21 = vmov 3  }
  0x2e   :  { %127 = vperm.xlu1 %944, %v1131_v0   ;;  %122 = vperm.xlu0 %943, %v1136_v1   ;;  %v1150_v6 = vld [vmem:[#allocation6 + $0x30] sm:$0xff]  ;;  %v1160_v9 = vld [vmem:[%s1510_s3 + $0x8] sm:$0xff]  ;;  %v1164_v10 = vld [vmem:[#allocation6 + $0x20] sm:$0xff]  ;;  %vm462_vm2 = vcmask 15360   ;;  %s843_s11 = sld [smem:[#allocation2 + $0x2]]  ;;  %vm487_vm3 = vcmask 1041408  }
  0x2f   :  { %880 = vmatprep.subr.mxu0 %v1070_v5  ;;  %896 = vmatprep.mubr.msk.f32.mxu0 %vm1071_vm0, %v1070_v5  ;;  %v106_v11 = vld [vmem:[%s1510_s3 + $0x20] sm:$0xff]  ;;  %v97_v12 = vld [vmem:[#allocation6 + $0x18] sm:$0xff]  ;;  %v1174_v13 = vld [vmem:[#allocation6 + $0x10] sm:$0xff]  ;;  %s68_s26 = sld [smem:[#allocation2]]  ;;  %s1075_s0 = smov [#allocation9]  }
  0x30   :  { %881 = vmatpush3.msra.mxu0 %v1140_v3  ;;  %v107_v14 = vld [vmem:[%s1510_s3 + $0x28] sm:$0xff]  ;;  %v1185_v16 = vld [vmem:[#allocation6] sm:$0xff]  ;;  %v1207_v19 = vld [vmem:[%s1510_s3 + $0x38] sm:$0xff] }
  0x31   :  { %882 = vmatprep.subr.mxu0 %v1070_v5  ;;  %v1180_v15 = vld [vmem:[#allocation6 + $0x8] sm:$0xff]  ;;  %v1190_v17 = vld [vmem:[%s1510_s3] sm:$0xff] }
  0x32   :  { %945 = vset.pattern.permute.xlu1 %v1072_v7  ;;  %142 = vperm.xlu0 %943, %v1145_v4   ;;  %v384_v18 = vld [vmem:[%s1511_s4] sm:$0x3]  ;;  %s828_s4 = sshll.u32 %s1075_s0, 4  ;;  %s829_s4 = int_to_ptr.vmem [resolvable:$true] %s828_s4 }
  0x33   :  { %171 = vperm.xlu1 %945, %v1131_v0   ;;  %883 = vmatpush3.msra.mxu0 %v1150_v6  ;;  %v86_v22 = vld [vmem:[%s1513_s6] sm:$0xff]  ;;  %p1039_p2 = scmp.lt.s32.totalorder %s829_s4, %s829_s4 }
  0x34   :  { %884 = vmatprep.subr.mxu0 %v1070_v5  ;;  %901 = vmatprep.mubr.msk.f32.mxu1 %vm462_vm2, %v86_v22  ;;  %v386_v63 = vstv %s843_s11 }
  0x35   :  { %885 = vmatpush3.msra.mxu0 %v1154_v8 }
  0x36   :  { %117 = vperm.xlu0 %943, %v1160_v9   ;;  %886 = vmatprep.subr.mxu0 %v1070_v5 }
  0x37   :  { %946 = vset.pattern.permute.xlu1 %v1069_v2  ;;  %887 = vmatpush3.msra.mxu0 %v1164_v10 }
  0x38   :  { %132 = vperm.xlu1 %946, %v106_v11   ;;  %888 = vmatprep.subr.mxu0 %v1070_v5 }
  0x39   :  { %889 = vmatpush3.msra.mxu0 %v97_v12 }
  0x3a   :  { %948 = vset.pattern.permute.xlu0 %v1072_v7  ;;  %890 = vmatprep.subr.mxu0 %v1070_v5 }
  0x3b   :  { %167 = vperm.xlu0 %948, %v1136_v1   ;;  %891 = vmatpush3.msra.mxu0 %v1174_v13 }
  0x3c   :  { %137 = vperm.xlu1 %946, %v107_v14   ;;  %892 = vmatprep.subr.mxu0 %v1070_v5 }
  0x3d   :  { %893 = vmatpush3.msra.mxu0 %v1180_v15 }
  0x3e   :  { %894 = vmatprep.subr.mxu0 %v1070_v5 }
  0x3f   :  { %175 = vperm.xlu0 %948, %v106_v11   ;;  %895 = vmatpush3.msra.mxu0 %v1185_v16 }
  0x40   :  { %112 = vperm.xlu1 %946, %v1190_v17   ;;  %897 = vmatmul.mubr.msk.f32.vlgmr.msra.gmra.mxu0 %vm198_vm1, %v384_v18 }
  0x41   :  { %708 = vmatprep.mubr.f32.mxu0 %v1070_v5 }
  0x43   :  { %179 = vperm.xlu0 %948, %v107_v14  }
  0x44   :  { %947 = vset.pattern.permute.xlu1 %v1072_v7 }
  0x45   :  { %159 = vperm.xlu1 %947, %v1190_v17  }
  0x47   :  { %163 = vperm.xlu0 %948, %v1160_v9  }
  0x49   :  { %183 = vperm.xlu1 %947, %v1145_v4  }
  0x4b   :  { %951 = vset.pattern.permute.xlu0 %v1073_v20 }
  0x4c   :  { %313 = vperm.xlu0 %951, %v1136_v1  }
  0x4d   :  { %949 = vset.pattern.permute.xlu1 %v1069_v2 }
  0x4e   :  { %147 = vperm.xlu1 %949, %v1207_v19  }
  0x52   :  { %950 = vset.pattern.permute.xlu1 %v1072_v7  ;;  %v87_v7 = vld [vmem:[%s1513_s6 + $0x8] sm:$0xff] }
  0x53   :  { %187 = vperm.xlu1 %950, %v1207_v19  }
  0x57   :  { %952 = vset.pattern.permute.xlu1 %v1074_v21 }
  0x58   :  { %353 = vperm.xlu1 %952, %v1136_v1  }
  0x5c   :  { %953 = vset.pattern.permute.xlu1 %v1073_v20 }
  0x5d   :  { %317 = vperm.xlu1 %953, %v1131_v0  }
  0x61   :  { %954 = vset.pattern.permute.xlu1 %v1074_v21 }
  0x62   :  { %357 = vperm.xlu1 %954, %v1131_v0  }
  0x66   :  { %955 = vset.pattern.permute.xlu1 %v1073_v20 }
  0x67   :  { %321 = vperm.xlu1 %955, %v106_v11  }
  0x6b   :  { %956 = vset.pattern.permute.xlu1 %v1074_v21 }
  0x6c   :  { %361 = vperm.xlu1 %956, %v106_v11   ;;  %v89_v11 = vld [vmem:[%s1513_s6 + $0x18] sm:$0xff] }
  0x70   :  { %957 = vset.pattern.permute.xlu1 %v1073_v20 }
  0x71   :  { %325 = vperm.xlu1 %957, %v107_v14  }
  0x75   :  { %958 = vset.pattern.permute.xlu1 %v1074_v21 }
  0x76   :  { %365 = vperm.xlu1 %958, %v107_v14  }
  0x7a   :  { %959 = vset.pattern.permute.xlu1 %v1073_v20 }
  0x7b   :  { %305 = vperm.xlu1 %959, %v1190_v17  }
  0x7f   :  { %960 = vset.pattern.permute.xlu1 %v1074_v21 }
  0xa9   :  { %v123_v23 = vpop.permute.xlu0 %122  ;;  %v128_v24 = vpop.permute.xlu1 %127 }
  0xaa   :  { %v153_v25 = vmul.f32 %v128_v24, %v97_v12  ;;  %v152_v32 = vmul.f32 %v123_v23, %v1174_v13  ;;  %v90_v12 = vld [vmem:[%s1513_s6 + $0x20] sm:$0xff]  ;;  %v91_v13 = vld [vmem:[%s1513_s6 + $0x28] sm:$0xff] }
  0xad   :  { %v143_v26 = vpop.permute.xlu0 %142 }
  0xae   :  { %v172_v27 = vpop.permute.xlu1 %171  ;;  %v156_v51 = vmul.f32 %v143_v26, %v1150_v6 }
  0xaf   :  { %v1230_v28 = vadd.f32 %v172_v27, %v153_v25 }
  0xb1   :  { %v118_v29 = vpop.permute.xlu0 %117  ;;  %v208_v30 = vsel %vm198_vm1, %v1230_v28, 0.0 }
  0xb2   :  { %209 = vadd.xlane.f32.xlu0 %v208_v30  ;;  %v151_v47 = vmul.f32 %v118_v29, %v1180_v15  ;;  %v92_v15 = vld [vmem:[%s1513_s6 + $0x30] sm:$0xff] }
  0xb3   :  { %v133_v31 = vpop.permute.xlu1 %132 }
  0xb4   :  { %v154_v34 = vmul.f32 %v133_v31, %v1164_v10 }
  0xb6   :  { %v168_v33 = vpop.permute.xlu0 %167 }
  0xb7   :  { %v1236_v35 = vadd.f32 %v168_v33, %v152_v32  ;;  %v138_v36 = vpop.permute.xlu1 %137 }
  0xb8   :  { %v155_v41 = vmul.f32 %v138_v36, %v1154_v8  ;;  %v88_v8 = vld [vmem:[%s1513_s6 + $0x10] sm:$0xff] }
  0xb9   :  { %v205_v37 = vsel %vm198_vm1, %v1236_v35, 0.0 }
  0xba   :  { %v176_v38 = vpop.permute.xlu0 %175  ;;  %206 = vadd.xlane.f32.xlu1 %v205_v37 }
  0xbb   :  { %v1240_v39 = vadd.f32 %v176_v38, %v154_v34  ;;  %v113_v40 = vpop.permute.xlu1 %112 }
  0xbc   :  { %v150_v44 = vmul.f32 %v113_v40, %v1185_v16  ;;  %v93_v16 = vld [vmem:[%s1513_s6 + $0x38] sm:$0xff]  ;;  %s842_s6 = sld [smem:[#allocation2 + $0x1]] }
  0xbd   :  { %v211_v42 = vsel %vm198_vm1, %v1240_v39, 0.0 }
  0xbe   :  { %v180_v43 = vpop.permute.xlu0 %179  ;;  %212 = vadd.xlane.f32.xlu0 %v211_v42 }
  0xbf   :  { %v1246_v45 = vadd.f32 %v180_v43, %v155_v41  ;;  %v617_v43 = vld [vmem:[#allocation7 + $0x68] sm:$0xff] }
  0xc0   :  { %v160_v46 = vpop.permute.xlu1 %159 }
  0xc1   :  { %v1249_v48 = vadd.f32 %v160_v46, %v150_v44  ;;  %v214_v49 = vsel %vm198_vm1, %v1246_v45, 0.0  ;;  %v616_v44 = vld [vmem:[#allocation7 + $0x60] sm:$0xff]  ;;  %v615_v46 = vld [vmem:[#allocation7 + $0x58] sm:$0xff] }
  0xc2   :  { %v164_v50 = vpop.permute.xlu0 %163  ;;  %215 = vadd.xlane.f32.xlu1 %v214_v49  ;;  %v613_v49 = vld [vmem:[#allocation7 + $0x48] sm:$0xff] }
  0xc3   :  { %v1254_v52 = vadd.f32 %v164_v50, %v151_v47  ;;  %v199_v53 = vsel %vm198_vm1, %v1249_v48, 0.0  ;;  %v614_v47 = vld [vmem:[#allocation7 + $0x50] sm:$0xff]  ;;  %v611_v50 = vld [vmem:[#allocation7 + $0x38] sm:$0xff] }
  0xc4   :  { %v184_v54 = vpop.permute.xlu1 %183  ;;  %200 = vadd.xlane.f32.xlu0 %v199_v53  ;;  %v609_v53 = vld [vmem:[#allocation7 + $0x28] sm:$0xff] }
  0xc5   :  { %v1258_v55 = vadd.f32 %v184_v54, %v156_v51  ;;  %v202_v57 = vsel %vm198_vm1, %v1254_v52, 0.0  ;;  %v610_v51 = vld [vmem:[#allocation7 + $0x30] sm:$0xff]  ;;  %v608_v54 = vld [vmem:[#allocation7 + $0x20] sm:$0xff] }
  0xc7   :  { %v217_v56 = vsel %vm198_vm1, %v1258_v55, 0.0  ;;  %v1314_v23 = vpop.permute.xlu0 %313 }
  0xc8   :  { %218 = vadd.xlane.f32.xlu1 %v217_v56  ;;  %203 = vadd.xlane.f32.xlu0 %v202_v57  ;;  %v607_v56 = vld [vmem:[#allocation7 + $0x18] sm:$0xff]  ;;  %v606_v57 = vld [vmem:[#allocation7 + $0x10] sm:$0xff] }
  0xc9   :  { %v148_v58 = vpop.permute.xlu1 %147 }
  0xca   :  { %v157_v59 = vmul.f32 %v148_v58, %v1140_v3  ;;  %v605_v58 = vld [vmem:[#allocation7 + $0x8] sm:$0xff] }
  0xce   :  { %v188_v60 = vpop.permute.xlu1 %187 }
  0xcf   :  { %v1265_v61 = vadd.f32 %v188_v60, %v157_v59  ;;  %v604_v59 = vld [vmem:[#allocation7] sm:$0xff] }
  0xd1   :  { %v220_v62 = vsel %vm198_vm1, %v1265_v61, 0.0 }
  0xd2   :  { %221 = vadd.xlane.f32.xlu1 %v220_v62 }
  0xd3   :  { %v1279_v10 = vpop.permute.xlu1 %353 }
  0xd8   :  { %v1294_v14 = vpop.permute.xlu1 %317 }
  0xde   :  { %329 = vperm.xlu0 %951, %v1145_v4  }
  0xe2   :  { %961 = vset.pattern.permute.xlu0 %v1074_v21 }
  0xe3   :  { %345 = vperm.xlu1 %960, %v1190_v17   ;;  %v1304_v17 = vpop.permute.xlu1 %357 }
  0xe7   :  { %962 = vset.pattern.permute.xlu1 %v1073_v20  ;;  %v1308_v18 = vpop.permute.xlu1 %321 }
  0xeb   :  { %v1310_v20 = vpop.permute.xlu1 %361 }
  0xef   :  { %v1312_v22 = vpop.permute.xlu1 %325 }
  0xf3   :  { %v1316_v24 = vpop.permute.xlu1 %365 }
  0xf7   :  { %v1321_v29 = vpop.permute.xlu1 %305 }
 0x100   :  { %v456_v0 = vpop.f32.mrf.mxu0 }
 0x101   :  { %v457_v1 = vadd.f32 %v456_v0, %v386_v63 }
 0x102   :  { %v898_v2 = vpop.f32.mrf.mxu0 }
 0x103   :  { %964 = vtanh.f32 %v457_v1 }
 0x110   :  { %v965_v3 = vpop.eup %964 }
 0x111   :  { %v461_v6 = vmax.f32 %v965_v3, 0.0 }
 0x113   :  { %899 = vmatprep.subr.msk.mxu1 %vm487_vm3, %v461_v6 }
 0x114   :  { %900 = vmatpush3.msk.msra.mxu1 %vm487_vm3, %v461_v6 }
 0x115   :  { %902 = vmatmul.mubr.msk.f32.vlgmr.msra.gmra.mxu1 %vm462_vm2, %v87_v7 }
 0x116   :  { %904 = vmatprep.mubr.msk.f32.mxu1 %vm462_vm2, %v88_v8 }
 0x119   :  { %905 = vmatmul.mubr.msk.f32.gmra.mxu1 %vm462_vm2, %v89_v11 }
 0x11a   :  { %907 = vmatprep.mubr.msk.f32.mxu1 %vm462_vm2, %v90_v12 }
 0x11d   :  { %908 = vmatmul.mubr.msk.f32.gmra.mxu1 %vm462_vm2, %v91_v13 }
 0x11e   :  { %910 = vmatprep.mubr.msk.f32.mxu1 %vm462_vm2, %v92_v15 }
 0x121   :  { %911 = vmatmul.mubr.msk.f32.gmra.mxu1 %vm462_vm2, %v93_v16 }
 0x122   :  { %720 = vmatprep.mubr.f32.mxu1 %v1070_v5 }
 0x13b   :  { %v210_v25 = vpop.xlane.xlu0 %209 }
 0x13c   :  { %v227_v26 = vmul.f32 0.015625, %v210_v25 }
 0x13e   :  { %v1319_v27 = vsub.f32 %v1230_v28, %v227_v26 }
 0x140   :  { %v243_v30 = vmul.f32 %v1319_v27, %v1319_v27 }
 0x142   :  { %v257_v31 = vsel %vm198_vm1, %v243_v30, 0.0 }
 0x143   :  { %258 = vadd.xlane.f32.xlu1 %v257_v31  ;;  %v207_v32 = vpop.xlane.xlu1 %206 }
 0x144   :  { %v226_v33 = vmul.f32 0.015625, %v207_v32 }
 0x146   :  { %v1327_v34 = vsub.f32 %v1236_v35, %v226_v33  ;;  %v619_v35 = vld [vmem:[#allocation7 + $0x78] sm:$0xff] }
 0x147   :  { %v213_v36 = vpop.xlane.xlu0 %212  ;;  %913 = vmatprep.subr.mxu1 %v619_v35  ;;  %660 = vmatprep.subr.mxu0 %v619_v35 }
 0x148   :  { %v228_v37 = vmul.f32 0.015625, %v213_v36  ;;  %v242_v38 = vmul.f32 %v1327_v34, %v1327_v34 }
 0x14a   :  { %v1332_v28 = vsub.f32 %v1240_v39, %v228_v37  ;;  %v254_v40 = vsel %vm198_vm1, %v242_v38, 0.0  ;;  %v618_v39 = vld [vmem:[#allocation7 + $0x70] sm:$0xff] }
 0x14b   :  { %255 = vadd.xlane.f32.xlu0 %v254_v40  ;;  %921 = vmatpush1.msra.mxu1 %v618_v39 }
 0x14c   :  { %v244_v41 = vmul.f32 %v1332_v28, %v1332_v28  ;;  %661 = vmatpush1.msra.mxu0 %v618_v39  ;;  %914 = vmatprep.subr.mxu1 %v617_v43 }
 0x14d   :  { %662 = vmatprep.subr.mxu0 %v617_v43  ;;  %922 = vmatpush1.msra.mxu1 %v616_v44  ;;  %v201_v63 = vpop.xlane.xlu0 %200 }
 0x14e   :  { %v260_v42 = vsel %vm198_vm1, %v244_v41, 0.0  ;;  %663 = vmatpush1.msra.mxu0 %v616_v44  ;;  %915 = vmatprep.subr.mxu1 %v615_v46  ;;  %v224_v3 = vmul.f32 0.015625, %v201_v63 }
 0x14f   :  { %261 = vadd.xlane.f32.xlu0 %v260_v42  ;;  %664 = vmatprep.subr.mxu0 %v615_v46 }
 0x150   :  { %923 = vmatpush1.msra.mxu1 %v614_v47  ;;  %665 = vmatpush1.msra.mxu0 %v614_v47  ;;  %v1351_v12 = vsub.f32 %v1249_v48, %v224_v3 }
 0x151   :  { %916 = vmatprep.subr.mxu1 %v613_v49  ;;  %666 = vmatprep.subr.mxu0 %v613_v49  ;;  %v204_v11 = vpop.xlane.xlu0 %203 }
 0x152   :  { %v225_v13 = vmul.f32 0.015625, %v204_v11  ;;  %v240_v48 = vmul.f32 %v1351_v12, %v1351_v12 }
 0x154   :  { %309 = vperm.xlu1 %962, %v1160_v9   ;;  %v248_v30 = vsel %vm198_vm1, %v240_v48, 0.0 }
 0x158   :  { %333 = vperm.xlu1 %962, %v1207_v19  }
 0x159   :  { %v1376_v37 = vpop.permute.xlu0 %329 }
 0x15c   :  { %963 = vset.pattern.permute.xlu1 %v1074_v21  ;;  %v612_v21 = vld [vmem:[#allocation7 + $0x40] sm:$0xff] }
 0x15d   :  { %924 = vmatpush1.msra.mxu1 %v612_v21  ;;  %667 = vmatpush1.msra.mxu0 %v612_v21 }
 0x15e   :  { %917 = vmatprep.subr.mxu1 %v611_v50  ;;  %668 = vmatprep.subr.mxu0 %v611_v50 }
 0x15f   :  { %925 = vmatpush1.msra.mxu1 %v610_v51  ;;  %669 = vmatpush1.msra.mxu0 %v610_v51 }
 0x160   :  { %918 = vmatprep.subr.mxu1 %v609_v53  ;;  %670 = vmatprep.subr.mxu0 %v609_v53 }
 0x161   :  { %926 = vmatpush1.msra.mxu1 %v608_v54  ;;  %671 = vmatpush1.msra.mxu0 %v608_v54 }
 0x162   :  { %919 = vmatprep.subr.mxu1 %v607_v56  ;;  %672 = vmatprep.subr.mxu0 %v607_v56 }
 0x163   :  { %927 = vmatpush1.msra.mxu1 %v606_v57  ;;  %673 = vmatpush1.msra.mxu0 %v606_v57 }
 0x164   :  { %920 = vmatprep.subr.mxu1 %v605_v58  ;;  %674 = vmatprep.subr.mxu0 %v605_v58 }
 0x165   :  { %369 = vperm.xlu0 %961, %v1145_v4   ;;  %v216_v4 = vpop.xlane.xlu1 %215  ;;  %928 = vmatpush1.msra.mxu1 %v604_v59 }
 0x166   :  { %v229_v60 = vmul.f32 0.015625, %v216_v4  ;;  %675 = vmatpush1.msra.mxu0 %v604_v59 }
 0x168   :  { %v1343_v0 = vsub.f32 %v1246_v45, %v229_v60 }
 0x169   :  { %v219_v62 = vpop.xlane.xlu1 %218 }
 0x16a   :  { %v230_v1 = vmul.f32 0.015625, %v219_v62  ;;  %v245_v8 = vmul.f32 %v1343_v0, %v1343_v0 }
 0x16c   :  { %v1346_v6 = vsub.f32 %v1258_v55, %v230_v1  ;;  %v263_v45 = vsel %vm198_vm1, %v245_v8, 0.0  ;;  %v1360_v55 = vsub.f32 %v1254_v52, %v225_v13 }
 0x16d   :  { %v222_v2 = vpop.xlane.xlu1 %221 }
 0x16e   :  { %v231_v7 = vmul.f32 0.015625, %v222_v2  ;;  %v246_v16 = vmul.f32 %v1346_v6, %v1346_v6  ;;  %v241_v31 = vmul.f32 %v1360_v55, %v1360_v55 }
 0x170   :  { %v1354_v15 = vsub.f32 %v1265_v61, %v231_v7  ;;  %v266_v25 = vsel %vm198_vm1, %v246_v16, 0.0  ;;  %v251_v52 = vsel %vm198_vm1, %v241_v31, 0.0 }
 0x171   :  { %v1374_v32 = vpop.permute.xlu1 %345 }
 0x172   :  { %v247_v26 = vmul.f32 %v1354_v15, %v1354_v15 }
 0x174   :  { %v269_v61 = vsel %vm198_vm1, %v247_v26, 0.0 }
 0x17c   :  { %264 = vadd.xlane.f32.xlu1 %v263_v45 }
 0x180   :  { %267 = vadd.xlane.f32.xlu1 %v266_v25 }
 0x184   :  { %270 = vadd.xlane.f32.xlu1 %v269_v61  ;;  %249 = vadd.xlane.f32.xlu0 %v248_v30 }
 0x188   :  { %252 = vadd.xlane.f32.xlu0 %v251_v52 }
 0x195   :  { %373 = vperm.xlu1 %963, %v1207_v19  }
 0x19e   :  { %349 = vperm.xlu0 %961, %v1160_v9  }
 0x1cc   :  { %v259_v33 = vpop.xlane.xlu1 %258 }
 0x1cd   :  { %v275_v36 = vmul.f32 0.015625, %v259_v33 }
 0x1cf   :  { %v283_v38 = vadd.f32 1e-05, %v275_v36 }
 0x1d1   :  { %966 = vrsqrt.f32 %v283_v38 }
 0x1d4   :  { %v256_v40 = vpop.xlane.xlu0 %255 }
 0x1d5   :  { %v274_v41 = vmul.f32 0.015625, %v256_v40  ;;  %v1378_v44 = vpop.f32.mrf.mxu1 }
 0x1d7   :  { %v282_v42 = vadd.f32 1e-05, %v274_v41  ;;  %v1380_v9 = vpop.f32.mrf.mxu1 }
 0x1d8   :  { %v262_v35 = vpop.xlane.xlu0 %261 }
 0x1d9   :  { %968 = vrsqrt.f32 %v282_v42  ;;  %v276_v39 = vmul.f32 0.015625, %v262_v35  ;;  %v906_v21 = vpop.f32.mrf.mxu1 }
 0x1db   :  { %v284_v43 = vadd.f32 1e-05, %v276_v39  ;;  %v567_v54 = vpop.f32.mrf.mxu1 }
 0x1dd   :  { %970 = vrsqrt.f32 %v284_v43 }
 0x1de   :  { %v967_v19 = vpop.eup %966 }
 0x1df   :  { %v299_v46 = vmul.f32 %v967_v19, %v1319_v27  ;;  %v909_v27 = vpop.f32.mrf.mxu1 }
 0x1e0   :  { %v370_v63 = vpop.permute.xlu0 %369 }
 0x1e1   :  { %v339_v50 = vmul.f32 %v1294_v14, %v299_v46 }
 0x1e3   :  { %v379_v4 = vadd.f32 %v1304_v17, %v339_v50  ;;  %v310_v17 = vpop.permute.xlu1 %309 }
 0x1e6   :  { %v969_v47 = vpop.eup %968 }
 0x1e7   :  { %v298_v49 = vmul.f32 %v969_v47, %v1327_v34  ;;  %v599_v34 = vmul.f32 %v906_v21, %v379_v4 }
 0x1e9   :  { %v338_v51 = vmul.f32 %v1314_v23, %v298_v49  ;;  %v577_v23 = vpop.f32.mrf.mxu1 }
 0x1ea   :  { %v971_v53 = vpop.eup %970 }
 0x1eb   :  { %v378_v56 = vadd.f32 %v1279_v10, %v338_v51  ;;  %v300_v57 = vmul.f32 %v971_v53, %v1332_v28  ;;  %v912_v52 = vpop.f32.mrf.mxu1  ;;  %v75_v53 = vld [vmem:[%s1508_s1 + $0x28] sm:$0xff] }
 0x1ed   :  { %v598_v58 = vmul.f32 %v567_v54, %v378_v56  ;;  %v340_v59 = vmul.f32 %v1308_v18, %v300_v57  ;;  %v334_v18 = vpop.permute.xlu1 %333  ;;  %v587_v42 = vpop.f32.mrf.mxu1 }
 0x1ef   :  { %856 = vmatmul.mubr.msk.f32.vlgmr.msra.gmra.mxu1 %vm198_vm1, %v598_v58  ;;  %v380_v14 = vadd.f32 %v1310_v20, %v340_v59  ;;  %v77_v58 = vld [vmem:[%s1508_s1 + $0x38] sm:$0xff] }
 0x1f0   :  { %726 = vmatprep.mubr.f32.mxu1 %v1070_v5 }
 0x1f1   :  { %v600_v10 = vmul.f32 %v577_v23, %v380_v14  ;;  %v78_v23 = vld [vmem:[%s1508_s1 + $0x40] sm:$0xff] }
 0x1f3   :  { %857 = vmatmul.mubr.msk.f32.gmra.mxu1 %vm198_vm1, %v599_v34 }
 0x1f4   :  { %732 = vmatprep.mubr.f32.mxu1 %v1070_v5 }
 0x1f7   :  { %858 = vmatmul.mubr.msk.f32.gmra.mxu1 %vm198_vm1, %v600_v10 }
 0x1f8   :  { %738 = vmatprep.mubr.f32.mxu1 %v1070_v5 }
 0x205   :  { %v265_v28 = vpop.xlane.xlu1 %264 }
 0x206   :  { %v277_v60 = vmul.f32 0.015625, %v265_v28 }
 0x208   :  { %v285_v62 = vadd.f32 1e-05, %v277_v60  ;;  %v79_v60 = vld [vmem:[%s1508_s1 + $0x48] sm:$0xff] }
 0x209   :  { %v268_v1 = vpop.xlane.xlu1 %267 }
 0x20a   :  { %972 = vrsqrt.f32 %v285_v62  ;;  %v278_v2 = vmul.f32 0.015625, %v268_v1 }
 0x20c   :  { %v286_v20 = vadd.f32 1e-05, %v278_v2 }
 0x20d   :  { %v271_v3 = vpop.xlane.xlu1 %270  ;;  %v250_v7 = vpop.xlane.xlu0 %249 }
 0x20e   :  { %974 = vrsqrt.f32 %v286_v20  ;;  %v279_v8 = vmul.f32 0.015625, %v271_v3  ;;  %v272_v11 = vmul.f32 0.015625, %v250_v7 }
 0x210   :  { %v287_v13 = vadd.f32 1e-05, %v279_v8  ;;  %v280_v45 = vadd.f32 1e-05, %v272_v11 }
 0x211   :  { %v253_v16 = vpop.xlane.xlu0 %252 }
 0x212   :  { %976 = vrsqrt.f32 %v287_v13  ;;  %v273_v25 = vmul.f32 0.015625, %v253_v16  ;;  %v80_v16 = vld [vmem:[%s1508_s1 + $0x50] sm:$0xff] }
 0x213   :  { %978 = vrsqrt.f32 %v280_v45 }
 0x214   :  { %v281_v26 = vadd.f32 1e-05, %v273_v25  ;;  %v81_v25 = vld [vmem:[%s1508_s1 + $0x58] sm:$0xff] }
 0x216   :  { %980 = vrsqrt.f32 %v281_v26 }
 0x217   :  { %v973_v48 = vpop.eup %972 }
 0x218   :  { %v301_v61 = vmul.f32 %v973_v48, %v1343_v0 }
 0x21a   :  { %v341_v30 = vmul.f32 %v1312_v22, %v301_v61  ;;  %v374_v22 = vpop.permute.xlu1 %373  ;;  %v82_v61 = vld [vmem:[%s1508_s1 + $0x60] sm:$0xff] }
 0x21b   :  { %v975_v31 = vpop.eup %974 }
 0x21c   :  { %v381_v33 = vadd.f32 %v1316_v24, %v341_v30  ;;  %v302_v36 = vmul.f32 %v975_v31, %v1346_v6 }
 0x21e   :  { %v601_v38 = vmul.f32 %v909_v27, %v381_v33  ;;  %v342_v40 = vmul.f32 %v1376_v37, %v302_v36  ;;  %v83_v33 = vld [vmem:[%s1508_s1 + $0x68] sm:$0xff] }
 0x21f   :  { %v977_v41 = vpop.eup %976 }
 0x220   :  { %v979_v35 = vpop.eup %978  ;;  %859 = vmatmul.mubr.msk.f32.gmra.mxu1 %vm198_vm1, %v601_v38  ;;  %v382_v39 = vadd.f32 %v370_v63, %v342_v40  ;;  %v303_v43 = vmul.f32 %v977_v41, %v1354_v15 }
 0x221   :  { %v296_v0 = vmul.f32 %v979_v35, %v1351_v12  ;;  %744 = vmatprep.mubr.f32.mxu1 %v1070_v5  ;;  %v350_v12 = vpop.permute.xlu0 %349 }
 0x222   :  { %v602_v19 = vmul.f32 %v587_v42, %v382_v39  ;;  %v343_v24 = vmul.f32 %v334_v18, %v303_v43  ;;  %v84_v42 = vld [vmem:[%s1508_s1 + $0x70] sm:$0xff] }
 0x223   :  { %v981_v46 = vpop.eup %980  ;;  %v336_v6 = vmul.f32 %v1321_v29, %v296_v0  ;;  %v70_v0 = vld [vmem:[%s1508_s1] sm:$0xff] }
 0x224   :  { %v297_v37 = vmul.f32 %v981_v46, %v1360_v55  ;;  %v383_v47 = vadd.f32 %v374_v22, %v343_v24  ;;  %860 = vmatmul.mubr.msk.f32.gmra.mxu1 %vm198_vm1, %v602_v19  ;;  %v74_v55 = vld [vmem:[%s1508_s1 + $0x20] sm:$0xff]  ;;  %v85_v19 = vld [vmem:[%s1508_s1 + $0x78] sm:$0xff] }
 0x225   :  { %750 = vmatprep.mubr.f32.mxu1 %v1070_v5  ;;  %v376_v49 = vadd.f32 %v1374_v32, %v336_v6  ;;  %v1420_v32 = vstv %s842_s6 }
 0x226   :  { %v337_v15 = vmul.f32 %v310_v17, %v297_v37  ;;  %v603_v21 = vmul.f32 %v912_v52, %v383_v47  ;;  %v780_v57 = vmul.f32 %v1420_v32, %v75_v53  ;;  %v782_v18 = vmul.f32 %v1420_v32, %v77_v58  ;;  %v71_v37 = vld [vmem:[%s1508_s1 + $0x8] sm:$0xff] }
 0x227   :  { %v596_v50 = vmul.f32 %v1380_v9, %v376_v49  ;;  %v1422_v9 = vstv %s68_s26  ;;  %v783_v1 = vmul.f32 %v1420_v32, %v78_v23  ;;  %v784_v7 = vmul.f32 %v1420_v32, %v79_v60 }
 0x228   :  { %v377_v51 = vadd.f32 %v350_v12, %v337_v15  ;;  %861 = vmatmul.mubr.msk.f32.gmra.mxu1 %vm198_vm1, %v603_v21  ;;  %v785_v26 = vmul.f32 %v1420_v32, %v80_v16  ;;  %v786_v31 = vmul.f32 %v1420_v32, %v81_v25  ;;  %v787_v40 = vmul.f32 %v1420_v32, %v82_v61 }
 0x229   :  { %854 = vmatmul.mubr.msk.f32.vlgmr.msra.gmra.mxu0 %vm198_vm1, %v596_v50  ;;  %v788_v43 = vmul.f32 %v1420_v32, %v83_v33  ;;  %v789_v6 = vmul.f32 %v1420_v32, %v84_v42  ;;  %v775_v47 = vmul.f32 %v1420_v32, %v70_v0  ;;  %v790_v50 = vmul.f32 %v1420_v32, %v85_v19 }
 0x22a   :  { %v597_v29 = vmul.f32 %v1378_v44, %v377_v51  ;;  %714 = vmatprep.mubr.f32.mxu0 %v1070_v5  ;;  %v779_v44 = vmul.f32 %v1420_v32, %v74_v55  ;;  %v76_v5 = vld [vmem:[%s1508_s1 + $0x30] sm:$0xff]  ;;  %v776_v55 = vmul.f32 %v1420_v32, %v71_v37 }
 0x22b   :  { %v781_v34 = vmul.f32 %v1420_v32, %v76_v5  ;;  %v72_v51 = vld [vmem:[%s1508_s1 + $0x10] sm:$0xff] }
 0x22c   :  { %v777_v58 = vmul.f32 %v1420_v32, %v72_v51 }
 0x22d   :  { %855 = vmatmul.mubr.msk.f32.gmra.mxu0 %vm198_vm1, %v597_v29 }
 0x2af   :  { %v722_v54 = vpop.f32.mrf.mxu1 }
 0x2b0   :  { %v762_v56 = vmul.f32 %v1422_v9, %v722_v54 }
 0x2b1   :  { %v724_v4 = vpop.f32.mrf.mxu1 }
 0x2b2   :  { %v795_v59 = vadd.f32 %v779_v44, %v762_v56  ;;  %v763_v27 = vmul.f32 %v1422_v9, %v724_v4  ;;  %v73_v56 = vld [vmem:[%s1508_s1 + $0x18] sm:$0xff]  ;;  %s1034_s1 = scalar_lea.vmem %s829_s4, 2048 }
 0x2b3   :  { %v728_v14 = vpop.f32.mrf.mxu1  ;;  %v778_v23 = vmul.f32 %v1420_v32, %v73_v56  ;;  %p1035_p1 = scmp.ne.s32.totalorder %s829_s4, %s1034_s1  ;;  %p1040_p3 = scmp.lt.s32.totalorder %s1034_s1, %s1034_s1 }
 0x2b4   :  { %811 = vst [vmem:[#allocation9 + $0x20] sm:$0xff] %v795_v59  ;;  %v796_v10 = vadd.f32 %v780_v57, %v763_v27  ;;  %v764_v17 = vmul.f32 %v1422_v9, %v728_v14 }
 0x2b5   :  { %v730_v28 = vpop.f32.mrf.mxu1  ;;  %p1041_p4 = por %p1040_p3, %p1039_p2 }
 0x2b6   :  { %812 = vst [vmem:[#allocation9 + $0x28] sm:$0xff] %v796_v10  ;;  %v797_v62 = vadd.f32 %v781_v34, %v764_v17  ;;  %v765_v63 = vmul.f32 %v1422_v9, %v730_v28 }
 0x2b7   :  { %v734_v2 = vpop.f32.mrf.mxu1  ;;  %p1042_p5 = pnand %p1041_p4, %p1035_p1 }
 0x2b8   :  { %813 = vst [vmem:[#allocation9 + $0x30] sm:$0xff] %v797_v62  ;;  %v798_v20 = vadd.f32 %v782_v18, %v765_v63  ;;  %v766_v3 = vmul.f32 %v1422_v9, %v734_v2 }
 0x2b9   :  { %v736_v8 = vpop.f32.mrf.mxu1 }
 0x2ba   :  { %814 = vst [vmem:[#allocation9 + $0x38] sm:$0xff] %v798_v20  ;;  %v799_v11 = vadd.f32 %v783_v1, %v766_v3  ;;  %v767_v13 = vmul.f32 %v1422_v9, %v736_v8 }
 0x2bc   :  { %815 = vst [vmem:[#allocation9 + $0x40] sm:$0xff] %v799_v11  ;;  %v800_v45 = vadd.f32 %v784_v7, %v767_v13 }
 0x2be   :  { %816 = vst [vmem:[#allocation9 + $0x48] sm:$0xff] %v800_v45 }
 0x2e0   :  { %v740_v48 = vpop.f32.mrf.mxu1 }
 0x2e1   :  { %v768_v30 = vmul.f32 %v1422_v9, %v740_v48 }
 0x2e2   :  { %v742_v52 = vpop.f32.mrf.mxu1 }
 0x2e3   :  { %v801_v36 = vadd.f32 %v785_v26, %v768_v30  ;;  %v769_v38 = vmul.f32 %v1422_v9, %v742_v52 }
 0x2e4   :  { %v746_v41 = vpop.f32.mrf.mxu1 }
 0x2e5   :  { %817 = vst [vmem:[#allocation9 + $0x50] sm:$0xff] %v801_v36  ;;  %v802_v35 = vadd.f32 %v786_v31, %v769_v38  ;;  %v770_v39 = vmul.f32 %v1422_v9, %v746_v41 }
 0x2e6   :  { %v748_v22 = vpop.f32.mrf.mxu1 }
 0x2e7   :  { %818 = vst [vmem:[#allocation9 + $0x58] sm:$0xff] %v802_v35  ;;  %v803_v24 = vadd.f32 %v787_v40, %v770_v39  ;;  %v771_v46 = vmul.f32 %v1422_v9, %v748_v22 }
 0x2e8   :  { %v752_v49 = vpop.f32.mrf.mxu1 }
 0x2e9   :  { %819 = vst [vmem:[#allocation9 + $0x60] sm:$0xff] %v803_v24  ;;  %v804_v15 = vadd.f32 %v788_v43, %v771_v46  ;;  %v710_v21 = vpop.f32.mrf.mxu0  ;;  %v772_v12 = vmul.f32 %v1422_v9, %v752_v49 }
 0x2ea   :  { %v758_v29 = vmul.f32 %v1422_v9, %v710_v21  ;;  %v754_v53 = vpop.f32.mrf.mxu1 }
 0x2eb   :  { %820 = vst [vmem:[#allocation9 + $0x68] sm:$0xff] %v804_v15  ;;  %v805_v44 = vadd.f32 %v789_v6, %v772_v12  ;;  %v712_v54 = vpop.f32.mrf.mxu0  ;;  %v773_v5 = vmul.f32 %v1422_v9, %v754_v53 }
 0x2ec   :  { %v791_v57 = vadd.f32 %v775_v47, %v758_v29  ;;  %v759_v4 = vmul.f32 %v1422_v9, %v712_v54 }
 0x2ed   :  { %821 = vst [vmem:[#allocation9 + $0x70] sm:$0xff] %v805_v44  ;;  %v806_v59 = vadd.f32 %v790_v50, %v773_v5  ;;  %v716_v27 = vpop.f32.mrf.mxu0 }
 0x2ee   :  { %807 = vst [vmem:[#allocation9] sm:$0xff] %v791_v57  ;;  %v792_v34 = vadd.f32 %v776_v55, %v759_v4  ;;  %v760_v14 = vmul.f32 %v1422_v9, %v716_v27 }
 0x2ef   :  { %822 = vst [vmem:[#allocation9 + $0x78] sm:$0xff] %v806_v59  ;;  %v718_v10 = vpop.f32.mrf.mxu0 }
 0x2f0   :  { %808 = vst [vmem:[#allocation9 + $0x8] sm:$0xff] %v792_v34  ;;  %v793_v17 = vadd.f32 %v777_v58, %v760_v14  ;;  %v761_v18 = vmul.f32 %v1422_v9, %v718_v10 }
 0x2f2   :  { %809 = vst [vmem:[#allocation9 + $0x10] sm:$0xff] %v793_v17  ;;  %v794_v28 = vadd.f32 %v778_v23, %v761_v18 }
 0x2f4   :  { %810 = vst [vmem:[#allocation9 + $0x18] sm:$0xff] %v794_v28 }
 0x2f5   :  { %1045 = shalt.err (!%p1042_p5)
}
 0x2f6   :  { %834 = dma.vmem_to_hbm [thread:$0]  %s829_s4, 2048, %s1514_s7, [#allocation4], %s1067_s15, %s1067_s15, %s1068_s16  }
 0x2f7   :  { %1060 = dma.done.wait [#allocation4], 2048  }
 0x2f8   :  { %1061 = vsyncadd [#allocation4], 4294965248 }
 0x2f9   :  { %838 = vsyncpa [#allocation3], 1 }
 0x2fa   :  { %839 = vsyncpa [#allocation8], 1 }
 0x2fb   :  { %840 = vsyncpa [#allocation4], 1 }
 0x2fc   :  { %841 = vsyncpa [#allocation5], 1 }

</bundles_post_ra>
